<compile_context>
chip_gen: v7x
topology: tpu7x:2x2x1
jax: 0.10.0
libtpu: 0.0.40
codegen_flags: <defaults>
</compile_context>

<pallas_src>
import functools

import jax
import jax.numpy as jnp
from jax.experimental import pallas as pl
from jax.experimental.pallas import tpu as pltpu

_LANE = 128
_MIN_TILE_B = 128
_MAX_TILE_B = 8192
_TARGET_BLOCK_BYTES = int(1.5 * 1024 * 1024)  # ~85% of HBM roofline per tile sweep


def _round_up(x, m):
    return ((x + m - 1) // m) * m


def _smoothed_ce_kernel(predT_ref, tgt_ref, out_ref, *, one_minus_eps, u):
    """One batch tile of label-smoothed cross entropy (lane-dense layout).

    predT_ref: (C, tile_b) logits (classes on sublanes, batch on lanes)
    tgt_ref  : (1, tile_b) int32 class ids (-1 marks padding columns)
    out_ref  : (1, tile_b) f32 per-column loss (0 for padding columns)
    """
    x = predT_ref[...].astype(jnp.float32)                     # (C, tile_b)
    tgt = tgt_ref[...]                                          # (1, tile_b)

    # Numerically stable log-softmax stats along the class (sublane) axis.
    m = jnp.max(x, axis=0, keepdims=True)                       # (1, tile_b)
    shifted = x - m                                              # (C, tile_b)
    lse = jnp.log(jnp.sum(jnp.exp(shifted), axis=0, keepdims=True))

    # Smoothed one-hot folded into a single weighted reduction; sum_j w_j == 1:
    #   loss = -(sum_j w_j * (shifted_j - lse)) = lse - sum_j w_j * shifted_j
    cls = jax.lax.broadcasted_iota(jnp.int32, x.shape, 0)
    w = jnp.where(cls == tgt, jnp.float32(one_minus_eps), jnp.float32(u))
    per_col = lse - jnp.sum(w * shifted, axis=0, keepdims=True)  # (1, tile_b)

    # NaN-safe mask of padding / out-of-bounds columns (select, not multiply).
    out_ref[...] = jnp.where(tgt >= 0, per_col, jnp.float32(0.0))


def get_loss(pred, target, trans_feat=None, smoothing=True, max_tile_b=None):
    """Pallas equivalent of dgcnn_cls.get_loss().forward (smoothing=True).

    pred:   (B, n_class) float logits (f32 or bf16; other dtypes cast to f32)
    target: any shape flattening to (B,) int (as in .view(-1))
    trans_feat: unused (kept for signature parity)
    """
    del trans_feat
    if not smoothing:
        # TODO(synk): smoothing=False branch of the reference calls
        # F.cross_entropy(pred, gold) with an undefined `gold`; only the
        # smoothing=True path is implemented.
        raise NotImplementedError("only smoothing=True is supported")

    pred = jnp.asarray(pred)
    if pred.dtype not in (jnp.float32, jnp.bfloat16):
        pred = pred.astype(jnp.float32)
    target = jnp.asarray(target).reshape(-1).astype(jnp.int32)

    B, C = pred.shape
    if C < 2:
        raise ValueError("n_class must be >= 2 for label smoothing (eps/(C-1)).")
    eps = 0.2
    u = eps / (C - 1)

    bp = _round_up(B, _LANE)

    # C-aware tile size: ~1.5 MiB pred block, multiple of 128 lanes, and split
    # the (128-padded) batch evenly across tiles so no tile is mostly dead.
    itemsize = pred.dtype.itemsize
    cap = _TARGET_BLOCK_BYTES // (itemsize * C)
    cap = max(_MIN_TILE_B, min(_MAX_TILE_B, (cap // _LANE) * _LANE))
    if max_tile_b is not None:
        cap = max(_LANE, min(cap, (max_tile_b // _LANE) * _LANE))
    num_tiles = pl.cdiv(bp, cap)
    tile_b = _round_up(pl.cdiv(bp, num_tiles), _LANE)
    grid_b = pl.cdiv(bp, tile_b)

    # Single fused transpose (+ at most 127 pad columns); dtype passes through.
    predT = pred.T                                              # (C, B)
    tgt = target
    if bp != B:
        predT = jnp.pad(predT, ((0, 0), (0, bp - B)))
        tgt = jnp.pad(tgt, (0, bp - B), constant_values=-1)
    tgt = tgt.reshape(1, bp)

    kernel = functools.partial(_smoothed_ce_kernel,
                               one_minus_eps=1.0 - eps, u=u)

    per_col = pl.pallas_call(
        kernel,
        out_shape=jax.ShapeDtypeStruct((1, bp), jnp.float32),
        grid=(grid_b,),
        in_specs=[
            pl.BlockSpec((C, tile_b), lambda i: (0, i)),
            pl.BlockSpec((1, tile_b), lambda i: (0, i)),
        ],
        out_specs=pl.BlockSpec((1, tile_b), lambda i: (0, i)),
        compiler_params=pltpu.CompilerParams(
            dimension_semantics=("parallel",),
            vmem_limit_bytes=32 * 1024 * 1024,
        ),
    )(predT, tgt)

    # Tiny final reduction + mean scale outside the kernel (keeps the grid
    # fully parallel; padded columns are exact zeros).
    return jnp.sum(per_col) / jnp.float32(B)


def _reference_loss(pred, target, eps=0.2):
    """Pure-JAX reference mirroring the PyTorch code (for sanity check)."""
    pred = jnp.asarray(pred, jnp.float32)
    target = jnp.asarray(target).reshape(-1)
    B, C = pred.shape
    one_hot = jax.nn.one_hot(target, C, dtype=jnp.float32)
    one_hot = one_hot * (1 - eps) + (1 - one_hot) * eps / (C - 1)
    log_prb = jax.nn.log_softmax(pred, axis=1)
    return -(one_hot * log_prb).sum(axis=1).mean()


if __name__ == "__main__":
    key = jax.random.PRNGKey(0)
    k_pred, k_tgt, k_tf = jax.random.split(key, 3)

    # Small classification-sized case (single 128-lane tile).
    B, n_class = 8, 16
    pred = jax.random.normal(k_pred, (B, n_class), dtype=jnp.float32)
    target = jax.random.randint(k_tgt, (B,), 0, n_class, dtype=jnp.int32)
    trans_feat = jax.random.normal(k_tf, (B, 4, 4), dtype=jnp.float32)  # unused

    loss = jax.block_until_ready(get_loss(pred, target, trans_feat, smoothing=True))
    ref = _reference_loss(pred, target)
    assert jnp.allclose(loss, ref, atol=1e-5, rtol=1e-5), (loss, ref)

    # Multi-tile + ragged-tail case (forced small tiles to exercise the grid,
    # the partial last block and the padding mask).
    B2, C2 = 600, 40
    pred2 = jax.random.normal(k_pred, (B2, C2), dtype=jnp.float32)
    target2 = jax.random.randint(k_tgt, (B2,), 0, C2, dtype=jnp.int32)
    loss2 = jax.block_until_ready(
        get_loss(pred2, target2, None, smoothing=True, max_tile_b=256))
    ref2 = _reference_loss(pred2, target2)
    assert jnp.allclose(loss2, ref2, atol=1e-4, rtol=1e-5), (loss2, ref2)

    # bf16 logits pass straight through to the kernel (upcast happens in-VMEM).
    B3, C3 = 256, 40
    pred3 = jax.random.normal(k_pred, (B3, C3), dtype=jnp.float32).astype(jnp.bfloat16)
    target3 = jax.random.randint(k_tgt, (B3,), 0, C3, dtype=jnp.int32)
    loss3 = jax.block_until_ready(get_loss(pred3, target3, None, smoothing=True))
    ref3 = _reference_loss(pred3.astype(jnp.float32), target3)
    assert jnp.allclose(loss3, ref3, atol=1e-4, rtol=1e-4), (loss3, ref3)

    print("KERNEL_OK")
</pallas_src>

<mosaic_0001>
module attributes {stable_mosaic.version = 11 : i64} {
  func.func @_smoothed_ce_kernel(%arg0: i32, %arg1: memref<16x128xf32, #tpu.memory_space<vmem>>, %arg2: memref<1x128xi32, #tpu.memory_space<vmem>>, %arg3: memref<1x128xf32, #tpu.memory_space<vmem>>) attributes {dimension_semantics = [#tpu.dimension_semantics<parallel>], iteration_bounds = array<i64: 1>, scalar_prefetch = 0 : i64, scratch_operands = 0 : i64, tpu.core_type = #tpu.core_type<tc>, window_params = [{transform_indices = @transform_0, window_bounds = array<i64: 16, 128>}, {transform_indices = @transform_1, window_bounds = array<i64: 1, 128>}, {transform_indices = @transform_2, window_bounds = array<i64: 1, 128>}]} {
    %c0 = arith.constant 0 : index
    %c0_0 = arith.constant 0 : index
    %0 = vector.load %arg1[%c0, %c0_0] : memref<16x128xf32, #tpu.memory_space<vmem>>, vector<16x128xf32>
    %c0_1 = arith.constant 0 : index
    %c0_2 = arith.constant 0 : index
    %1 = vector.load %arg2[%c0_1, %c0_2] : memref<1x128xi32, #tpu.memory_space<vmem>>, vector<1x128xi32>
    %cst = arith.constant dense<0xFF800000> : vector<128xf32>
    %2 = vector.multi_reduction <maximumf>, %0, %cst [0] : vector<16x128xf32> to vector<128xf32>
    %3 = vector.shape_cast %2 : vector<128xf32> to vector<1x128xf32>
    %4 = vector.broadcast %3 : vector<1x128xf32> to vector<16x128xf32>
    %5 = arith.subf %0, %4 : vector<16x128xf32>
    %6 = math.exp %5 : vector<16x128xf32>
    %cst_3 = arith.constant dense<0.000000e+00> : vector<128xf32>
    %7 = vector.multi_reduction <add>, %6, %cst_3 [0] : vector<16x128xf32> to vector<128xf32>
    %8 = vector.shape_cast %7 : vector<128xf32> to vector<1x128xf32>
    %9 = math.log %8 : vector<1x128xf32>
    %10 = tpu.iota {dimensions = array<i32: 0>} : vector<16x128xi32>
    %11 = vector.broadcast %1 : vector<1x128xi32> to vector<16x128xi32>
    %12 = arith.cmpi eq, %10, %11 : vector<16x128xi32>
    %cst_4 = arith.constant 8.000000e-01 : f32
    %cst_5 = arith.constant 0.0133333337 : f32
    %13 = vector.broadcast %cst_4 : f32 to vector<16x128xf32>
    %14 = vector.broadcast %cst_5 : f32 to vector<16x128xf32>
    %15 = arith.select %12, %13, %14 : vector<16x128xi1>, vector<16x128xf32>
    %16 = arith.mulf %15, %5 : vector<16x128xf32>
    %cst_6 = arith.constant dense<0.000000e+00> : vector<128xf32>
    %17 = vector.multi_reduction <add>, %16, %cst_6 [0] : vector<16x128xf32> to vector<128xf32>
    %18 = vector.shape_cast %17 : vector<128xf32> to vector<1x128xf32>
    %19 = arith.subf %9, %18 : vector<1x128xf32>
    %c0_i32 = arith.constant 0 : i32
    %20 = vector.broadcast %c0_i32 : i32 to vector<1x128xi32>
    %21 = arith.cmpi sge, %1, %20 : vector<1x128xi32>
    %cst_7 = arith.constant 0.000000e+00 : f32
    %22 = vector.broadcast %cst_7 : f32 to vector<1x128xf32>
    %23 = arith.select %21, %19, %22 : vector<1x128xi1>, vector<1x128xf32>
    %c0_8 = arith.constant 0 : index
    %c0_9 = arith.constant 0 : index
    %24 = vector.load %arg3[%c0_8, %c0_9] : memref<1x128xf32, #tpu.memory_space<vmem>>, vector<1x128xf32>
    tpu.vector_store %arg3[%c0_8, %c0_9], %23 {strides = array<i32>} : memref<1x128xf32, #tpu.memory_space<vmem>>, vector<1x128xf32>,
    return
  }
  func.func @transform_0(%arg0: i32) -> (i32, i32) {
    %c0_i32 = arith.constant 0 : i32
    %c0_i32_0 = arith.constant 0 : i32
    return %c0_i32, %arg0 : i32, i32
  }
  func.func @transform_1(%arg0: i32) -> (i32, i32) {
    %c0_i32 = arith.constant 0 : i32
    %c0_i32_0 = arith.constant 0 : i32
    return %c0_i32, %arg0 : i32, i32
  }
  func.func @transform_2(%arg0: i32) -> (i32, i32) {
    %c0_i32 = arith.constant 0 : i32
    %c0_i32_0 = arith.constant 0 : i32
    return %c0_i32, %arg0 : i32, i32
  }
}

</mosaic_0001>

<bundles_post_ra>
// kernel: tpu_custom_call.1
= control target key start
LH: loop header
LB: loop body
LE: loop exit
PB: predicated region body
PF: predicated region fallthrough
CT: control target
= control target key end

     0   :  { %7 = vsyncpa [#allocation3], 0  ;;  %s196_s0 = inlined_call_operand.hbm [shape: f32[16,128], index: 0, kind: input, shape index: {}]   ;;  %s197_s1 = inlined_call_operand.vmem [shape: s32[1,128], index: 1, kind: input, shape index: {}]   ;;  %s198_s2 = inlined_call_operand.hbm [shape: f32[1,128], index: 2, kind: output, shape index: {}]  }
   0x1   :  { %8 = vsyncpa [#allocation4], 0  ;;  %s149_s9 = smov [#allocation2]   ;;  %s101_s13 = scalar_lea.hbm %s196_s0, 256 }
   0x2   :  { %s14_s10 = sshll.u32 %s149_s9, 4  ;;  %p102_p0 = scmp.ne.s32.totalorder %s196_s0, %s101_s13  ;;  %s15_s10 = int_to_ptr.vmem [resolvable:$true] %s14_s10 }
   0x3   :  { %p105_p1 = scmp.lt.u32.totalorder %s101_s13, %s196_s0 }
   0x5   :  { %p107_p2 = pnand %p105_p1, %p102_p0 }
   0x7   :  { %110 = shalt.err (!%p107_p2)
}
   0x8   :  { %s111_s18 = scalar_lea.vmem %s15_s10, 256  ;;  %p116_p4 = scmp.lt.s32.totalorder %s15_s10, %s15_s10 }
   0x9   :  { %p112_p3 = scmp.ne.s32.totalorder %s15_s10, %s111_s18  ;;  %p117_p5 = scmp.lt.s32.totalorder %s111_s18, %s111_s18 }
   0xb   :  { %p118_p6 = por %p117_p5, %p116_p4 }
   0xd   :  { %p119_p7 = pnand %p118_p6, %p112_p3 }
   0xf   :  { %122 = shalt.err (!%p119_p7)
}
  0x10   :  { %s150_s19 = smov 128   ;;  %s151_s20 = smov 8  }
  0x11   :  { %20 = dma.hbm_to_vmem [thread:$0]  %s196_s0, 256, %s15_s10, [#allocation3], %s150_s19, %s150_s19, %s151_s20  }
  0x12   :  { %145 = dma.done.wait [#allocation3], 256  }
  0x13   :  { %146 = vsyncadd [#allocation3], 4294967040  ;;  %v26_v0 = vld [vmem:[#allocation2] sm:$0xff]  ;;  %v27_v1 = vld [vmem:[#allocation2 + $0x8] sm:$0xff]  ;;  %v51_v4 = vlaneseq  ;;  %v152_v19 = vmov 0.013333334  }
  0x14   :  { %v29_v2 = vmax.f32 %v26_v0, %v27_v1  ;;  %v28_v11 = vld [vmem:[%s197_s1] sm:$0x1]  ;;  %s153_s0 = smov [#allocation5]  }
  0x15   :  { %v52_v7 = vshrl.u32 %v51_v4, 7  ;;  %s81_s1 = sshll.u32 %s153_s0, 4  ;;  %vm72_vm2 = vcmp.ge.s32.totalorder %v28_v11, 0  ;;  %s82_s1 = int_to_ptr.vmem [resolvable:$true] %s81_s1 }
  0x16   :  { %v30_v3 = vrot.slane %v29_v2, 4  ;;  %s123_s25 = scalar_lea.vmem %s82_s1, 16  ;;  %s127_s26 = scalar_lea.vmem %s82_s1, 32 }
  0x17   :  { %v56_v10 = vsub.s32 0, %v52_v7  ;;  %v53_v15 = vadd.s32 8, %v52_v7  ;;  %p124_p8 = scmp.ne.s32.totalorder %s82_s1, %s123_s25  ;;  %p128_p9 = scmp.lt.s32.totalorder %s82_s1, %s82_s1 }
  0x18   :  { %v31_v5 = vmax.f32 %v29_v2, %v30_v3  ;;  %p129_p10 = scmp.lt.s32.totalorder %s127_s26, %s123_s25 }
  0x19   :  { %v57_v16 = vrot.slane %v28_v11, %v56_v10 }
  0x1a   :  { %v32_v6 = vrot.slane %v31_v5, 2  ;;  %p130_p11 = por %p129_p10, %p128_p9 }
  0x1b   :  { %vm58_vm0 = vcmp.eq.s32.totalorder %v52_v7, %v57_v16  ;;  %vm59_vm1 = vcmp.eq.s32.totalorder %v53_v15, %v57_v16 }
  0x1c   :  { %v33_v8 = vmax.f32 %v31_v5, %v32_v6  ;;  %v60_v20 = vsel %vm58_vm0, 0.8, %v152_v19  ;;  %v61_v21 = vsel %vm59_vm1, 0.8, %v152_v19  ;;  %p131_p12 = pnand %p130_p11, %p124_p8 }
  0x1e   :  { %v34_v9 = vrot.slane %v33_v8, 1 }
  0x20   :  { %v35_v12 = vmax.f32 %v33_v8, %v34_v9 }
  0x22   :  { %v36_v13 = vsub.f32 %v26_v0, %v35_v12  ;;  %v37_v14 = vsub.f32 %v27_v1, %v35_v12 }
  0x24   :  { %v38_v17 = vmul.f32 1.442695, %v36_v13  ;;  %v40_v18 = vmul.f32 1.442695, %v37_v14  ;;  %v62_v22 = vmul.f32 %v60_v20, %v36_v13  ;;  %v63_v23 = vmul.f32 %v61_v21, %v37_v14 }
  0x26   :  { %95 = vpow2.f32 %v38_v17  ;;  %v64_v26 = vadd.f32 %v63_v23, %v62_v22 }
  0x27   :  { %97 = vpow2.f32 %v40_v18 }
  0x28   :  { %v65_v29 = vrot.slane %v64_v26, 4 }
  0x2a   :  { %v66_v32 = vadd.f32 %v65_v29, %v64_v26 }
  0x2c   :  { %v67_v35 = vrot.slane %v66_v32, 2 }
  0x2e   :  { %v68_v37 = vadd.f32 %v67_v35, %v66_v32 }
  0x30   :  { %v96_v24 = vpop.eup %95  ;;  %v69_v38 = vrot.slane %v68_v37, 1 }
  0x31   :  { %v98_v25 = vpop.eup %97 }
  0x32   :  { %v42_v27 = vadd.f32 %v98_v25, %v96_v24  ;;  %v70_v39 = vadd.f32 %v69_v38, %v68_v37 }
  0x34   :  { %v43_v28 = vrot.slane %v42_v27, 4 }
  0x36   :  { %v44_v30 = vadd.f32 %v43_v28, %v42_v27 }
  0x38   :  { %v45_v31 = vrot.slane %v44_v30, 2 }
  0x3a   :  { %v46_v33 = vadd.f32 %v45_v31, %v44_v30 }
  0x3c   :  { %v47_v34 = vrot.slane %v46_v33, 1 }
  0x3e   :  { %v48_v36 = vadd.f32 %v47_v34, %v46_v33 }
  0x40   :  { %99 = vlog2.f32 %v48_v36 }
  0x4a   :  { %v100_v40 = vpop.eup %99 }
  0x4b   :  { %v50_v41 = vmul.f32 0.6931472, %v100_v40 }
  0x4d   :  { %v71_v42 = vsub.f32 %v50_v41, %v70_v39 }
  0x4f   :  { %v73_v43 = vsel %vm72_vm2, %v71_v42, 0.0 }
  0x50   :  { %74 = vst [vmem:[#allocation5] sm:$0x1] %v73_v43 }
  0x51   :  { %134 = shalt.err (!%p131_p12)
}
  0x52   :  { %s135_s29 = scalar_lea.hbm %s198_s2, 16 }
  0x53   :  { %p136_p13 = scmp.ne.s32.totalorder %s198_s2, %s135_s29  ;;  %p139_p0 = scmp.lt.u32.totalorder %s135_s29, %s198_s2 }
  0x55   :  { %p141_p1 = pnand %p139_p0, %p136_p13 }
  0x57   :  { %144 = shalt.err (!%p141_p1)
}
  0x58   :  { %84 = dma.vmem_to_hbm [thread:$0]  %s82_s1, 16, %s198_s2, [#allocation4]  }
  0x59   :  { %147 = dma.done.wait [#allocation4], 16  }
  0x5a   :  { %148 = vsyncadd [#allocation4], 4294967280 }
  0x5b   :  { %88 = vsyncpa [#allocation3], 1 }
  0x5c   :  { %89 = vsyncpa [#allocation4], 1 }

</bundles_post_ra>
